<compile_context>
chip_gen: v7x
topology: tpu7x:2x2x1
jax: 0.10.0
libtpu: 0.0.40
codegen_flags: <defaults>
</compile_context>

<pallas_src>
import functools

import numpy as np
import jax
import jax.numpy as jnp
from jax.experimental import pallas as pl
from jax.experimental.pallas import tpu as pltpu


def _conv_bn_lrelu_kernel(x_ref, w_ref, scale_ref, bias_ref, o_ref, *,
                          K, W, L, neg_slope):
    """One batch element: valid Conv2d(stride=1) + folded BatchNorm(eval) + LeakyReLU.

    x_ref:     (1, C_in, H*W + K - 1)  lane-dense flattened activations (zero-padded tail)
    w_ref:     (K*K, C_out, C_in)      per-tap weight matrices (VMEM)
    scale_ref: (C_out, 1)              folded BN scale (VMEM)
    bias_ref:  (C_out, 1)              folded BN bias  (VMEM)
    o_ref:     (1, C_out, L)           L = Ho * W (row-wrapped; last K-1 cols/row are dropped later)
    """
    x = x_ref[0]                                     # (C_in, H*W + K - 1)
    c_out = o_ref.shape[1]

    acc = jnp.zeros((c_out, L), jnp.float32)
    # K*K tap matmuls on the MXU; shifted slab built once per tap (hoisted out of any C_out loop).
    for kh in range(K):
        for kw in range(K):
            off = kh * W + kw                        # static lane offset
            x_shift = x[:, off:off + L]              # (C_in, L)
            w_tap = w_ref[kh * K + kw]               # (C_out, C_in)
            acc = acc + jnp.dot(w_tap, x_shift,
                                preferred_element_type=jnp.float32)

    y = acc * scale_ref[...] + bias_ref[...]         # folded BN affine, broadcast over lanes
    y = jnp.where(y > 0, y, neg_slope * y)           # LeakyReLU(0.01)
    o_ref[0] = y.astype(o_ref.dtype)                 # single lane-dense store


def conv_bn_lrelu(x, w, scale, bias, *, stride=1, pad=0, neg_slope=0.01):
    """x: (B, C_in, H, W) f32; w: (C_out, C_in, K, K); scale/bias: (C_out,) folded BN."""
    assert stride == 1  # TODO(synk): stride != 1 not implemented (module default is stride=1).
    if pad:
        x = jnp.pad(x, ((0, 0), (0, 0), (pad, pad), (pad, pad)))

    B, C_in, H, W = x.shape
    C_out, C_in_w, K, K2 = w.shape
    assert C_in_w == C_in and K == K2
    Ho, Wo = H - K + 1, W - K + 1
    L = Ho * W                                       # row-wrapped output length per channel

    # Lane-dense activations: flatten spatial onto lanes; pad by K-1 so every tap's
    # contiguous slice [off, off+L) (off <= (K-1)*(W+1)) stays in bounds.
    x_flat = jnp.pad(x.reshape(B, C_in, H * W), ((0, 0), (0, 0), (0, K - 1)))
    # Per-tap (C_out, C_in) weight matrices for the MXU path.
    w_taps = jnp.transpose(w, (2, 3, 0, 1)).reshape(K * K, C_out, C_in)

    kernel = functools.partial(_conv_bn_lrelu_kernel, K=K, W=W, L=L, neg_slope=neg_slope)

    out = pl.pallas_call(
        kernel,
        out_shape=jax.ShapeDtypeStruct((B, C_out, L), x.dtype),
        grid=(B,),
        in_specs=[
            pl.BlockSpec((1, C_in, H * W + K - 1), lambda b: (b, 0, 0)),  # per-batch activations
            pl.BlockSpec(memory_space=pltpu.MemorySpace.VMEM),            # tap weights
            pl.BlockSpec(memory_space=pltpu.MemorySpace.VMEM),            # folded BN scale
            pl.BlockSpec(memory_space=pltpu.MemorySpace.VMEM),            # folded BN bias
        ],
        out_specs=pl.BlockSpec((1, C_out, L), lambda b: (b, 0, 0)),
        compiler_params=pltpu.CompilerParams(dimension_semantics=("parallel",)),
    )(x_flat, w_taps, scale.reshape(C_out, 1), bias.reshape(C_out, 1))

    # Drop the K-1 wrap columns of every output row; restore NCHW.
    return out.reshape(B, C_out, Ho, W)[:, :, :, :Wo]


def _fold_bn(conv_bias, gamma, beta, mean, var, eps=1e-5):
    scale = gamma / jnp.sqrt(var + eps)
    bias = beta + (conv_bias - mean) * scale
    return scale, bias


def conv_forward(x, p, *, pad=0, stride=1):
    """Conv(in_ch, out_ch, kernel_size=3, stride=1, pad=False): Conv2d -> BN(eval) -> LeakyReLU."""
    # TODO(synk): BatchNorm uses running statistics (eval mode); training-mode batch stats not implemented.
    scale, bias = _fold_bn(p["b"], p["gamma"], p["beta"], p["mean"], p["var"])
    return conv_bn_lrelu(x, p["w"], scale, bias, stride=stride, pad=pad)


def init_params(key, in_ch, out_ch, k):
    ks = jax.random.split(key, 6)
    return {
        "w": 0.1 * jax.random.normal(ks[0], (out_ch, in_ch, k, k), jnp.float32),
        "b": 0.1 * jax.random.normal(ks[1], (out_ch,), jnp.float32),
        "gamma": 1.0 + 0.1 * jax.random.normal(ks[2], (out_ch,), jnp.float32),
        "beta": 0.1 * jax.random.normal(ks[3], (out_ch,), jnp.float32),
        "mean": 0.1 * jax.random.normal(ks[4], (out_ch,), jnp.float32),
        "var": jax.random.uniform(ks[5], (out_ch,), jnp.float32, 0.5, 1.5),
    }


def _ref_forward(x, p, eps=1e-5, neg_slope=0.01):
    """Pure-JAX reference matching PyTorch eval-mode semantics."""
    y = jax.lax.conv_general_dilated(
        x, p["w"], window_strides=(1, 1), padding="VALID",
        dimension_numbers=("NCHW", "OIHW", "NCHW"))
    y = y + p["b"][None, :, None, None]
    y = (y - p["mean"][None, :, None, None]) / jnp.sqrt(p["var"][None, :, None, None] + eps)
    y = y * p["gamma"][None, :, None, None] + p["beta"][None, :, None, None]
    return jnp.where(y > 0, y, neg_slope * y)


if __name__ == "__main__":
    key = jax.random.PRNGKey(0)
    kx, kp = jax.random.split(key)

    B, C_in, H, W = 2, 4, 16, 16
    C_out, K = 8, 3

    x = jax.random.normal(kx, (B, C_in, H, W), jnp.float32)
    params = init_params(kp, C_in, C_out, K)

    out = jax.block_until_ready(conv_forward(x, params))
    assert out.shape == (B, C_out, H - K + 1, W - K + 1), out.shape

    ref = _ref_forward(x, params)
    np.testing.assert_allclose(np.asarray(out), np.asarray(ref), rtol=2e-4, atol=2e-4)

    print("KERNEL_OK")
</pallas_src>

<mosaic_0001>
module attributes {stable_mosaic.version = 11 : i64} {
  func.func @_conv_bn_lrelu_kernel(%arg0: i32, %arg1: memref<1x4x258xf32, #tpu.memory_space<vmem>>, %arg2: memref<9x8x4xf32, #tpu.memory_space<vmem>>, %arg3: memref<8x1xf32, #tpu.memory_space<vmem>>, %arg4: memref<8x1xf32, #tpu.memory_space<vmem>>, %arg5: memref<1x8x224xf32, #tpu.memory_space<vmem>>) attributes {dimension_semantics = [#tpu.dimension_semantics<parallel>], iteration_bounds = array<i64: 2>, scalar_prefetch = 0 : i64, scratch_operands = 0 : i64, tpu.core_type = #tpu.core_type<tc>, window_params = [{transform_indices = @transform_0, window_bounds = array<i64: 1, 4, 258>}, {pipeline_mode = #tpu.pipeline_mode<synchronous>, transform_indices = @transform_1, window_bounds = array<i64: 9, 8, 4>}, {pipeline_mode = #tpu.pipeline_mode<synchronous>, transform_indices = @transform_2, window_bounds = array<i64: 8, 1>}, {pipeline_mode = #tpu.pipeline_mode<synchronous>, transform_indices = @transform_3, window_bounds = array<i64: 8, 1>}, {transform_indices = @transform_4, window_bounds = array<i64: 1, 8, 224>}]} {
    %c0 = arith.constant 0 : index
    %c0_0 = arith.constant 0 : index
    %c0_1 = arith.constant 0 : index
    %0 = vector.load %arg1[%c0, %c0_0, %c0_1] : memref<1x4x258xf32, #tpu.memory_space<vmem>>, vector<1x4x258xf32>
    %1 = vector.shape_cast %0 : vector<1x4x258xf32> to vector<4x258xf32>
    %cst = arith.constant 0.000000e+00 : f32
    %2 = vector.broadcast %cst : f32 to vector<8x224xf32>
    %3 = vector.extract_strided_slice %1 {offsets = [0, 0], sizes = [4, 224], strides = [1, 1]} : vector<4x258xf32> to vector<4x224xf32>
    %c0_2 = arith.constant 0 : index
    %c0_3 = arith.constant 0 : index
    %c0_4 = arith.constant 0 : index
    %4 = vector.load %arg2[%c0_2, %c0_3, %c0_4] : memref<9x8x4xf32, #tpu.memory_space<vmem>>, vector<1x8x4xf32>
    %5 = vector.shape_cast %4 : vector<1x8x4xf32> to vector<8x4xf32>
    %cst_5 = arith.constant dense<0.000000e+00> : vector<8x224xf32>
    %6 = tpu.matmul %5, %3, %cst_5 {dimension_numbers = #tpu.dot_dimension_numbers<[1], [0], [0], [1], [0, 0, 1, 1], [], []>} : vector<8x4xf32>, vector<4x224xf32>, vector<8x224xf32> -> vector<8x224xf32>
    %7 = arith.addf %2, %6 : vector<8x224xf32>
    %8 = vector.extract_strided_slice %1 {offsets = [0, 1], sizes = [4, 224], strides = [1, 1]} : vector<4x258xf32> to vector<4x224xf32>
    %c1 = arith.constant 1 : index
    %c0_6 = arith.constant 0 : index
    %c0_7 = arith.constant 0 : index
    %9 = vector.load %arg2[%c1, %c0_6, %c0_7] : memref<9x8x4xf32, #tpu.memory_space<vmem>>, vector<1x8x4xf32>
    %10 = vector.shape_cast %9 : vector<1x8x4xf32> to vector<8x4xf32>
    %cst_8 = arith.constant dense<0.000000e+00> : vector<8x224xf32>
    %11 = tpu.matmul %10, %8, %cst_8 {dimension_numbers = #tpu.dot_dimension_numbers<[1], [0], [0], [1], [0, 0, 1, 1], [], []>} : vector<8x4xf32>, vector<4x224xf32>, vector<8x224xf32> -> vector<8x224xf32>
    %12 = arith.addf %7, %11 : vector<8x224xf32>
    %13 = vector.extract_strided_slice %1 {offsets = [0, 2], sizes = [4, 224], strides = [1, 1]} : vector<4x258xf32> to vector<4x224xf32>
    %c2 = arith.constant 2 : index
    %c0_9 = arith.constant 0 : index
    %c0_10 = arith.constant 0 : index
    %14 = vector.load %arg2[%c2, %c0_9, %c0_10] : memref<9x8x4xf32, #tpu.memory_space<vmem>>, vector<1x8x4xf32>
    %15 = vector.shape_cast %14 : vector<1x8x4xf32> to vector<8x4xf32>
    %cst_11 = arith.constant dense<0.000000e+00> : vector<8x224xf32>
    %16 = tpu.matmul %15, %13, %cst_11 {dimension_numbers = #tpu.dot_dimension_numbers<[1], [0], [0], [1], [0, 0, 1, 1], [], []>} : vector<8x4xf32>, vector<4x224xf32>, vector<8x224xf32> -> vector<8x224xf32>
    %17 = arith.addf %12, %16 : vector<8x224xf32>
    %18 = vector.extract_strided_slice %1 {offsets = [0, 16], sizes = [4, 224], strides = [1, 1]} : vector<4x258xf32> to vector<4x224xf32>
    %c3 = arith.constant 3 : index
    %c0_12 = arith.constant 0 : index
    %c0_13 = arith.constant 0 : index
    %19 = vector.load %arg2[%c3, %c0_12, %c0_13] : memref<9x8x4xf32, #tpu.memory_space<vmem>>, vector<1x8x4xf32>
    %20 = vector.shape_cast %19 : vector<1x8x4xf32> to vector<8x4xf32>
    %cst_14 = arith.constant dense<0.000000e+00> : vector<8x224xf32>
    %21 = tpu.matmul %20, %18, %cst_14 {dimension_numbers = #tpu.dot_dimension_numbers<[1], [0], [0], [1], [0, 0, 1, 1], [], []>} : vector<8x4xf32>, vector<4x224xf32>, vector<8x224xf32> -> vector<8x224xf32>
    %22 = arith.addf %17, %21 : vector<8x224xf32>
    %23 = vector.extract_strided_slice %1 {offsets = [0, 17], sizes = [4, 224], strides = [1, 1]} : vector<4x258xf32> to vector<4x224xf32>
    %c4 = arith.constant 4 : index
    %c0_15 = arith.constant 0 : index
    %c0_16 = arith.constant 0 : index
    %24 = vector.load %arg2[%c4, %c0_15, %c0_16] : memref<9x8x4xf32, #tpu.memory_space<vmem>>, vector<1x8x4xf32>
    %25 = vector.shape_cast %24 : vector<1x8x4xf32> to vector<8x4xf32>
    %cst_17 = arith.constant dense<0.000000e+00> : vector<8x224xf32>
    %26 = tpu.matmul %25, %23, %cst_17 {dimension_numbers = #tpu.dot_dimension_numbers<[1], [0], [0], [1], [0, 0, 1, 1], [], []>} : vector<8x4xf32>, vector<4x224xf32>, vector<8x224xf32> -> vector<8x224xf32>
    %27 = arith.addf %22, %26 : vector<8x224xf32>
    %28 = vector.extract_strided_slice %1 {offsets = [0, 18], sizes = [4, 224], strides = [1, 1]} : vector<4x258xf32> to vector<4x224xf32>
    %c5 = arith.constant 5 : index
    %c0_18 = arith.constant 0 : index
    %c0_19 = arith.constant 0 : index
    %29 = vector.load %arg2[%c5, %c0_18, %c0_19] : memref<9x8x4xf32, #tpu.memory_space<vmem>>, vector<1x8x4xf32>
    %30 = vector.shape_cast %29 : vector<1x8x4xf32> to vector<8x4xf32>
    %cst_20 = arith.constant dense<0.000000e+00> : vector<8x224xf32>
    %31 = tpu.matmul %30, %28, %cst_20 {dimension_numbers = #tpu.dot_dimension_numbers<[1], [0], [0], [1], [0, 0, 1, 1], [], []>} : vector<8x4xf32>, vector<4x224xf32>, vector<8x224xf32> -> vector<8x224xf32>
    %32 = arith.addf %27, %31 : vector<8x224xf32>
    %33 = vector.extract_strided_slice %1 {offsets = [0, 32], sizes = [4, 224], strides = [1, 1]} : vector<4x258xf32> to vector<4x224xf32>
    %c6 = arith.constant 6 : index
    %c0_21 = arith.constant 0 : index
    %c0_22 = arith.constant 0 : index
    %34 = vector.load %arg2[%c6, %c0_21, %c0_22] : memref<9x8x4xf32, #tpu.memory_space<vmem>>, vector<1x8x4xf32>
    %35 = vector.shape_cast %34 : vector<1x8x4xf32> to vector<8x4xf32>
    %cst_23 = arith.constant dense<0.000000e+00> : vector<8x224xf32>
    %36 = tpu.matmul %35, %33, %cst_23 {dimension_numbers = #tpu.dot_dimension_numbers<[1], [0], [0], [1], [0, 0, 1, 1], [], []>} : vector<8x4xf32>, vector<4x224xf32>, vector<8x224xf32> -> vector<8x224xf32>
    %37 = arith.addf %32, %36 : vector<8x224xf32>
    %38 = vector.extract_strided_slice %1 {offsets = [0, 33], sizes = [4, 224], strides = [1, 1]} : vector<4x258xf32> to vector<4x224xf32>
    %c7 = arith.constant 7 : index
    %c0_24 = arith.constant 0 : index
    %c0_25 = arith.constant 0 : index
    %39 = vector.load %arg2[%c7, %c0_24, %c0_25] : memref<9x8x4xf32, #tpu.memory_space<vmem>>, vector<1x8x4xf32>
    %40 = vector.shape_cast %39 : vector<1x8x4xf32> to vector<8x4xf32>
    %cst_26 = arith.constant dense<0.000000e+00> : vector<8x224xf32>
    %41 = tpu.matmul %40, %38, %cst_26 {dimension_numbers = #tpu.dot_dimension_numbers<[1], [0], [0], [1], [0, 0, 1, 1], [], []>} : vector<8x4xf32>, vector<4x224xf32>, vector<8x224xf32> -> vector<8x224xf32>
    %42 = arith.addf %37, %41 : vector<8x224xf32>
    %43 = vector.extract_strided_slice %1 {offsets = [0, 34], sizes = [4, 224], strides = [1, 1]} : vector<4x258xf32> to vector<4x224xf32>
    %c8 = arith.constant 8 : index
    %c0_27 = arith.constant 0 : index
    %c0_28 = arith.constant 0 : index
    %44 = vector.load %arg2[%c8, %c0_27, %c0_28] : memref<9x8x4xf32, #tpu.memory_space<vmem>>, vector<1x8x4xf32>
    %45 = vector.shape_cast %44 : vector<1x8x4xf32> to vector<8x4xf32>
    %cst_29 = arith.constant dense<0.000000e+00> : vector<8x224xf32>
    %46 = tpu.matmul %45, %43, %cst_29 {dimension_numbers = #tpu.dot_dimension_numbers<[1], [0], [0], [1], [0, 0, 1, 1], [], []>} : vector<8x4xf32>, vector<4x224xf32>, vector<8x224xf32> -> vector<8x224xf32>
    %47 = arith.addf %42, %46 : vector<8x224xf32>
    %c0_30 = arith.constant 0 : index
    %c0_31 = arith.constant 0 : index
    %48 = vector.load %arg3[%c0_30, %c0_31] : memref<8x1xf32, #tpu.memory_space<vmem>>, vector<8x1xf32>
    %49 = vector.broadcast %48 : vector<8x1xf32> to vector<8x224xf32>
    %50 = arith.mulf %47, %49 : vector<8x224xf32>
    %c0_32 = arith.constant 0 : index
    %c0_33 = arith.constant 0 : index
    %51 = vector.load %arg4[%c0_32, %c0_33] : memref<8x1xf32, #tpu.memory_space<vmem>>, vector<8x1xf32>
    %52 = vector.broadcast %51 : vector<8x1xf32> to vector<8x224xf32>
    %53 = arith.addf %50, %52 : vector<8x224xf32>
    %cst_34 = arith.constant 0.000000e+00 : f32
    %54 = vector.broadcast %cst_34 : f32 to vector<8x224xf32>
    %55 = arith.cmpf ogt, %53, %54 : vector<8x224xf32>
    %cst_35 = arith.constant 0.00999999977 : f32
    %56 = vector.broadcast %cst_35 : f32 to vector<8x224xf32>
    %57 = arith.mulf %56, %53 : vector<8x224xf32>
    %58 = arith.select %55, %53, %57 : vector<8x224xi1>, vector<8x224xf32>
    %c0_36 = arith.constant 0 : index
    %c0_37 = arith.constant 0 : index
    %c0_38 = arith.constant 0 : index
    %59 = vector.load %arg5[%c0_36, %c0_37, %c0_38] : memref<1x8x224xf32, #tpu.memory_space<vmem>>, vector<1x8x224xf32>
    %60 = vector.shape_cast %59 : vector<1x8x224xf32> to vector<8x224xf32>
    %61 = vector.shape_cast %58 : vector<8x224xf32> to vector<1x8x224xf32>
    tpu.vector_store %arg5[%c0_36, %c0_37, %c0_38], %61 {strides = array<i32>} : memref<1x8x224xf32, #tpu.memory_space<vmem>>, vector<1x8x224xf32>,
    return
  }
  func.func @transform_0(%arg0: i32) -> (i32, i32, i32) {
    %c0_i32 = arith.constant 0 : i32
    %c0_i32_0 = arith.constant 0 : i32
    %c0_i32_1 = arith.constant 0 : i32
    return %arg0, %c0_i32, %c0_i32_0 : i32, i32, i32
  }
  func.func @transform_1(%arg0: i32) -> (i32, i32, i32) {
    %c0_i32 = arith.constant 0 : i32
    %c0_i32_0 = arith.constant 0 : i32
    %c0_i32_1 = arith.constant 0 : i32
    %c0_i32_2 = arith.constant 0 : i32
    return %c0_i32, %c0_i32_0, %c0_i32_1 : i32, i32, i32
  }
  func.func @transform_2(%arg0: i32) -> (i32, i32) {
    %c0_i32 = arith.constant 0 : i32
    %c0_i32_0 = arith.constant 0 : i32
    %c0_i32_1 = arith.constant 0 : i32
    return %c0_i32, %c0_i32_0 : i32, i32
  }
  func.func @transform_3(%arg0: i32) -> (i32, i32) {
    %c0_i32 = arith.constant 0 : i32
    %c0_i32_0 = arith.constant 0 : i32
    %c0_i32_1 = arith.constant 0 : i32
    return %c0_i32, %c0_i32_0 : i32, i32
  }
  func.func @transform_4(%arg0: i32) -> (i32, i32, i32) {
    %c0_i32 = arith.constant 0 : i32
    %c0_i32_0 = arith.constant 0 : i32
    %c0_i32_1 = arith.constant 0 : i32
    return %arg0, %c0_i32, %c0_i32_0 : i32, i32, i32
  }
}

</mosaic_0001>

<bundles_post_ra>
// kernel: tpu_custom_call.1
= control target key start
LH: loop header
LB: loop body
LE: loop exit
PB: predicated region body
PF: predicated region fallthrough
CT: control target
= control target key end

     0   :  { %9 = vsyncpa [#allocation3], 0  ;;  %s1477_s0 = inlined_call_operand.vmem [shape: f32[2,4,258], index: 0, kind: input, shape index: {}]   ;;  %s1478_s1 = inlined_call_operand.vmem [shape: f32[9,8,4], index: 1, kind: input, shape index: {}]   ;;  %s1479_s2 = inlined_call_operand.vmem [shape: f32[8,1], index: 2, kind: input, shape index: {}]   ;;  %s1480_s3 = inlined_call_operand.vmem [shape: f32[8,1], index: 3, kind: input, shape index: {}]   ;;  %s1481_s4 = inlined_call_operand.hbm [shape: f32[2,8,224], index: 4, kind: output, shape index: {}]  }
   0x1   :  { %11 = vsyncpa [#allocation3 + $0x1], 0  ;;  %s1304_s15 = smov 0   ;;  %s1306_s16 = smov 0  }
   0x2   :  { %s1308_s17 = smov 0   ;;  %s1310_s18 = smov 0  }
   0x3 LB: > { %s1325_s19 = sadd.s32 4294967295, %s1266_s18   ;;  %s1088_s20 = sadd.s32 4294967294, %s1266_s18   ;;  %s1266_s18 = sphi %s1310_s18, %s1487_s18   ;;  %s1262_s17 = sphi %s1308_s17, %s1486_s17   ;;  %s1258_s16 = sphi %s1306_s16, %s1485_s16   ;;  %s1254_s15 = sphi %s1304_s15, %s1484_s15  }
   0x4   : > { %s1329_s21 = sadd.s32 1, %s1266_s18   ;;  %s113_s22 = sadd.s32 1, %s1262_s17 }
   0x5   : > { %s110_s23 = ssub.s32 %s1266_s18, %s1329_s21  ;;  %p123_p0 = scmp.ne.s32.totalorder %s1262_s17, %s1258_s16 }
   0x6   : > { %p111_p1 = scmp.eq.s32.totalorder %s110_s23, 0  ;;  %p124_p2 = scmp.eq.s32.totalorder %s1325_s19, 1 }
   0x7   : > { %p129_p3 = scmp.ne.s32.totalorder %s1258_s16, %s1254_s15  ;;  %p130_p4 = scmp.eq.s32.totalorder %s1088_s20, 1 }
   0x8   : > { %s1340_s24 = scalar_select %p111_p1, %s1262_s17, %s113_s22  }
   0x9   : > { %p1342_p5 = por %p124_p2, %p123_p0  ;;  %p1346_p6 = por %p130_p4, %p129_p3 }
   0xa   : > { %p1091_p7 = scmp.ge.s32.totalorder %s1266_s18, 1  ;;  %p165_p8 = scmp.lt.s32.totalorder %s1266_s18, 3 }
   0xc   : > { %p166_p9 = pnand %p1091_p7, %p165_p8 }
   0xd   : > { %p191_p10 = scmp.lt.s32.totalorder (!%p166_p9), %s1325_s19, 1  ;;  %v1268_v0 = vmov (!%p166_p9), 0.0   ;;  %s1269_s6 = smov (!%p166_p9), 127   ;;  %v1276_v4 = vmov (!%p166_p9), 0   ;;  %v990_v5 = vld [vmem:[%s1479_s2] sm:$0xff] (!%p166_p9)  ;;  %vm213_vm0 = vcmask (!%p166_p9), 1043456  }
   0xe   : > { %169 = sbr.rel (%p166_p9) target bundleno = 416 (0x1a0), region = 36  ;;  %622 = vmatprep.mubr.f32.mxu0 (!%p166_p9), %v1268_v0  ;;  %282 = vmatprep.mubr.f32.mxu1 (!%p166_p9), %v1268_v0  ;;  %s1270_s7 = smov (!%p166_p9), 111   ;;  %v998_v6 = vld [vmem:[%s1480_s3] sm:$0xff] (!%p166_p9)  ;;  %vm207_vm1 = vcmask (!%p166_p9), 1039360   ;;  %vm549_vm2 = vcmask (!%p166_p9), 908288   ;;  %vm209_vm3 = vcmask (!%p166_p9), 31744  }
   0xf   : > { %s1271_s8 = smov (!%p166_p9), 110   ;;  %s1272_s9 = smov (!%p166_p9), 96   ;;  %1201 = vset.pattern.permute.xlu0 (!%p166_p9), %v1276_v4  ;;  %1202 = vset.pattern.permute.xlu1 (!%p166_p9), %v1276_v4  ;;  %v1109_v11 = vld [vmem:[%s1478_s1 + $0x20] sm:$0xff] (!%p166_p9)  ;;  %v1094_v12 = vld [vmem:[%s1478_s1 + $0x8] sm:$0xff] (!%p166_p9)  ;;  %vm637_vm4 = vcmask (!%p166_p9), 900096   ;;  %vm725_vm5 = vcmask (!%p166_p9), 785408  }
  0x10   : > { %s1273_s10 = smov (!%p166_p9), 95   ;;  %s1274_s11 = smov (!%p166_p9), 126   ;;  %v1113_v20 = vld [vmem:[%s1478_s1 + $0x28] sm:$0xff] (!%p166_p9)  ;;  %v198_v21 = vld [vmem:[%s1478_s1] sm:$0xff] (!%p166_p9)  ;;  %vm816_vm6 = vcmask (!%p166_p9), 777216   ;;  %vm373_vm7 = vcmask (!%p166_p9), 1031168  }
  0x11   : > { %s1275_s12 = smov (!%p166_p9), 94   ;;  %s1277_s13 = smov (!%p166_p9), 112   ;;  %v1117_v28 = vld [vmem:[%s1478_s1 + $0x30] sm:$0xff] (!%p166_p9)  ;;  %vm907_vm8 = vcmask (!%p166_p9), 769024   ;;  %v1121_v36 = vld [vmem:[%s1478_s1 + $0x38] sm:$0xff] (!%p166_p9)  ;;  %vm461_vm9 = vcmask (!%p166_p9), 916480  }
  0x12   : > { %v1101_v29 = vld [vmem:[%s1478_s1 + $0x10] sm:$0xff] (!%p166_p9)  ;;  %v1105_v40 = vld [vmem:[%s1478_s1 + $0x18] sm:$0xff] (!%p166_p9)  ;;  %v1125_v43 = vld [vmem:[%s1478_s1 + $0x40] sm:$0xff] (!%p166_p9)  ;;  %s1134_s30 = sshll.u32 (!%p166_p9), %s1325_s19, 8 }
  0x15   : > { %s192_s27 = scalar_select %p191_p10, %s1325_s19, 1 }
  0x17   : > { %s1151_s28 = smul.u32 12, %s192_s27 }
  0x19   : > { %s195_s5 = scalar_lea.vmem %s1477_s0, %s1151_s28  ;;  %s188_s28 = sand.u32 1, %s1258_s16  }
  0x1a   : > { %v196_v1 = vld [vmem:[%s195_s5] sm:$0xff]  ;;  %v197_v3 = vld [vmem:[%s195_s5 + $0x8] sm:$0xf]  ;;  %s1092_s29 = sshll.u32 %s188_s28, 4  ;;  %s1015_s19 = scalar_lea.sflag [#allocation3], %s188_s28 }
  0x1b   : > { %203 = vrot.lane.b32.xlu1 %v196_v1, %s1269_s6  ;;  %545 = vrot.lane.b32.xlu0 %v196_v1, %s1270_s7  ;;  %v202_v2 = vcombine.high %v196_v1, %v196_v1  ;;  %s190_s5 = scalar_lea.vmem [#allocation2], %s1092_s29 }
  0x1f   : > { %205 = vrot.lane.b32.xlu1 %v202_v2, %s1269_s6  ;;  %547 = vrot.lane.b32.xlu0 %v202_v2, %s1270_s7  ;;  %s1029_s6 = sshll.u32 %s190_s5, 4  ;;  %s1436_s6 = int_to_ptr.vmem [resolvable:$true] %s1029_s6 }
  0x23   : > { %635 = vrot.lane.b32.xlu1 %v202_v2, %s1271_s8  ;;  %633 = vrot.lane.b32.xlu0 %v196_v1, %s1271_s8 }
  0x27   : > { %723 = vrot.lane.b32.xlu1 %v202_v2, %s1272_s9  ;;  %721 = vrot.lane.b32.xlu0 %v196_v1, %s1272_s9  ;;  %s1434_s9 = scalar_lea.hbm %s1481_s4, %s1134_s30 }
  0x2b   : > { %814 = vrot.lane.b32.xlu1 %v197_v3, %s1273_s10  ;;  %812 = vrot.lane.b32.xlu0 %v202_v2, %s1273_s10 }
  0x2f   : > { %371 = vrot.lane.b32.xlu1 %v202_v2, %s1274_s11  ;;  %369 = vrot.lane.b32.xlu0 %v196_v1, %s1274_s11  ;;  %s1278_s11 = smov [#allocation2]  }
  0x33   : > { %903 = vrot.lane.b32.xlu1 %v202_v2, %s1275_s12  ;;  %810 = vrot.lane.b32.xlu0 %v196_v1, %s1273_s10  ;;  %s1204_s10 = scalar_lea.vmem %s1436_s6, 256 }
  0x34   : > { %p1205_p11 = scmp.ne.s32.totalorder %s1436_s6, %s1204_s10 }
  0x36   : > { %p1206_p12 = pnand %p1205_p11, %p1342_p5 }
  0x37   : > { %457 = vrot.lane.b32.xlu1 %v196_v1, %s1277_s13  ;;  %905 = vrot.lane.b32.xlu0 %v197_v3, %s1275_s12 }
  0x38   : > { %p1207_p13 = pneg %p1206_p12 }
  0x3b   : > { %901 = vrot.lane.b32.xlu1 %v196_v1, %s1275_s12  ;;  %459 = vrot.lane.b32.xlu0 %v202_v2, %s1277_s13  ;;  %s1208_s12 = sshll.u32 %s1278_s11, 4  ;;  %s1209_s12 = int_to_ptr.vmem [resolvable:$false] %s1208_s12 }
  0x3c   : > { %s1210_s13 = scalar_lea.vmem %s1209_s12, 512  ;;  %p1211_p0 = scmp.lt.s32.totalorder %s1436_s6, %s1209_s12 }
  0x3d   : > { %p1212_p1 = scmp.lt.s32.totalorder %s1210_s13, %s1204_s10 }
  0x3f   : > { %993 = vperm.xlu0 %1201, %v990_v5   ;;  %1001 = vperm.xlu1 %1202, %v998_v6   ;;  %p1213_p2 = por %p1212_p1, %p1211_p0 }
  0x41   : > { %p1214_p3 = pnand %p1213_p2, %p1207_p13 }
  0x8d   : > { %v204_v7 = vpop.permute.xlu1 %203  ;;  %v546_v8 = vpop.permute.xlu0 %545 }
  0x91   : > { %v206_v9 = vpop.permute.xlu1 %205  ;;  %v548_v10 = vpop.permute.xlu0 %547 }
  0x92   : > { %1095 = vmatprep.subr.msk.mxu1 %vm213_vm0, %v206_v9  ;;  %1110 = vmatprep.subr.msk.mxu0 %vm213_vm0, %v548_v10  ;;  %v208_v13 = vsel %vm207_vm1, %v204_v7, %v206_v9  ;;  %v550_v14 = vsel %vm549_vm2, %v546_v8, %v548_v10 }
  0x93   : > { %1096 = vmatpush1.msk.msra.mxu1 %vm213_vm0, %v208_v13  ;;  %1111 = vmatpush1.msk.msra.mxu0 %vm213_vm0, %v550_v14 }
  0x94   : > { %1112 = vmatmul.mubr.msk.f32.vlgmr.msra.gmra.mrb[0].mxu0 %vm209_vm3, %v1109_v11  ;;  %1097 = vmatmul.mubr.msk.f32.vlgmr.msra.gmra.mrb[0].mxu1 %vm209_vm3, %v1094_v12 }
  0x95   : > { %v636_v15 = vpop.permute.xlu1 %635  ;;  %v634_v16 = vpop.permute.xlu0 %633  ;;  %710 = vmatprep.mubr.f32.mxu0 %v1268_v0  ;;  %1098 = vmatprep.subr.msk.mxu1 %vm213_vm0, %v202_v2 }
  0x96   : > { %v638_v17 = vsel %vm637_vm4, %v634_v16, %v636_v15  ;;  %1114 = vmatprep.subr.msk.mxu0 %vm213_vm0, %v636_v15  ;;  %1099 = vmatpush1.msk.msra.mxu1 %vm213_vm0, %v196_v1 }
  0x97   : > { %1115 = vmatpush1.msk.msra.mxu0 %vm213_vm0, %v638_v17  ;;  %360 = vmatprep.mubr.f32.mxu1 %v1268_v0 }
  0x99   : > { %v724_v18 = vpop.permute.xlu1 %723  ;;  %v722_v19 = vpop.permute.xlu0 %721 }
  0x9a   : > { %v726_v22 = vsel %vm725_vm5, %v722_v19, %v724_v18  ;;  %1118 = vmatprep.subr.msk.mxu0 %vm213_vm0, %v724_v18 }
  0x9c   : > { %1116 = vmatmul.mubr.msk.f32.vlgmr.msra.gmra.mrb[0].mxu0 %vm209_vm3, %v1113_v20  ;;  %1100 = vmatmul.mubr.msk.f32.vlgmr.msra.gmra.mrb[0].mxu1 %vm209_vm3, %v198_v21 }
  0x9d   : > { %1119 = vmatpush1.msk.msra.mxu0 %vm213_vm0, %v726_v22  ;;  %v815_v23 = vpop.permute.xlu1 %814  ;;  %v813_v24 = vpop.permute.xlu0 %812  ;;  %798 = vmatprep.mubr.f32.mxu0 %v1268_v0 }
  0x9e   : > { %v818_v25 = vsel %vm816_vm6, %v813_v24, %v815_v23  ;;  %446 = vmatprep.mubr.f32.mxu1 %v1268_v0 }
  0x9f   : > { %1122 = vmatprep.subr.msk.mxu0 %vm213_vm0, %v818_v25 }
  0xa1   : > { %v372_v26 = vpop.permute.xlu1 %371  ;;  %v370_v27 = vpop.permute.xlu0 %369 }
  0xa2   : > { %v374_v30 = vsel %vm373_vm7, %v370_v27, %v372_v26  ;;  %1102 = vmatprep.subr.msk.mxu1 %vm213_vm0, %v372_v26 }
  0xa3   : > { %1103 = vmatpush1.msk.msra.mxu1 %vm213_vm0, %v374_v30 }
  0xa4   : > { %1120 = vmatmul.mubr.msk.f32.vlgmr.msra.gmra.mrb[0].mxu0 %vm209_vm3, %v1117_v28  ;;  %1104 = vmatmul.mubr.msk.f32.vlgmr.msra.gmra.mrb[0].mxu1 %vm209_vm3, %v1101_v29 }
  0xa5   : > { %v904_v31 = vpop.permute.xlu1 %903  ;;  %v811_v32 = vpop.permute.xlu0 %810  ;;  %890 = vmatprep.mubr.f32.mxu0 %v1268_v0  ;;  %534 = vmatprep.mubr.f32.mxu1 %v1268_v0 }
  0xa6   : > { %v817_v33 = vsel %vm816_vm6, %v811_v32, %v813_v24 }
  0xa7   : > { %1123 = vmatpush1.msk.msra.mxu0 %vm213_vm0, %v817_v33 }
  0xa9   : > { %v458_v34 = vpop.permute.xlu1 %457  ;;  %v906_v35 = vpop.permute.xlu0 %905 }
  0xaa   : > { %v909_v37 = vsel %vm907_vm8, %v904_v31, %v906_v35 }
  0xab   : > { %1126 = vmatprep.subr.msk.mxu0 %vm213_vm0, %v909_v37 }
  0xac   : > { %1124 = vmatmul.mubr.msk.f32.vlgmr.msra.gmra.mrb[0].mxu0 %vm209_vm3, %v1121_v36 }
  0xad   : > { %v902_v38 = vpop.permute.xlu1 %901  ;;  %v460_v39 = vpop.permute.xlu0 %459  ;;  %981 = vmatprep.mubr.f32.mxu0 %v1268_v0 }
  0xae   : > { %v908_v41 = vsel %vm907_vm8, %v902_v38, %v904_v31  ;;  %v462_v42 = vsel %vm461_vm9, %v458_v34, %v460_v39  ;;  %1106 = vmatprep.subr.msk.mxu1 %vm213_vm0, %v460_v39 }
  0xaf   : > { %1107 = vmatpush1.msk.msra.mxu1 %vm213_vm0, %v462_v42  ;;  %1127 = vmatpush1.msk.msra.mxu0 %vm213_vm0, %v908_v41 }
  0xb0   : > { %1108 = vmatmul.mubr.msk.f32.vlgmr.msra.gmra.mrb[0].mxu1 %vm209_vm3, %v1105_v40 }
  0xb4   : > { %1128 = vmatmul.mubr.msk.f32.vlgmr.msra.gmra.mrb[0].mxu0 %vm209_vm3, %v1125_v43 }
  0xbe   : > { %v994_v47 = vpop.permute.xlu0 %993  ;;  %v1002_v51 = vpop.permute.xlu1 %1001 }
 0x183   : > { %v536_v44 = vpop.f32.mrb[0].mxu1 }
 0x184   : > { %v538_v45 = vpop.f32.mrb[1].mxu1 }
 0x187   : > { %v983_v46 = vpop.f32.mrb[0].mxu0 }
 0x188   : > { %v1135_v48 = vadd.f32 %v983_v46, %v536_v44  ;;  %v985_v49 = vpop.f32.mrb[1].mxu0 }
 0x189   : > { %v1136_v50 = vadd.f32 %v985_v49, %v538_v45 }
 0x18a   : > { %v996_v52 = vmul.f32 %v1135_v48, %v994_v47 }
 0x18b   : > { %v997_v53 = vmul.f32 %v1136_v50, %v994_v47 }
 0x18c   : > { %v1004_v54 = vadd.f32 %v1002_v51, %v996_v52 }
 0x18d   : > { %v1005_v55 = vadd.f32 %v1002_v51, %v997_v53 }
 0x18e   : > { %vm1006_vm10 = vcmp.gt.f32.partialorder %v1004_v54, 0.0  ;;  %v1008_v56 = vmul.f32 0.01, %v1004_v54 }
 0x18f   : > { %vm1007_vm11 = vcmp.gt.f32.partialorder %v1005_v55, 0.0  ;;  %v1009_v57 = vmul.f32 0.01, %v1005_v55 }
 0x190   : > { %v1010_v58 = vsel %vm1006_vm10, %v1004_v54, %v1008_v56 }
 0x191   : > { %v1011_v59 = vsel %vm1007_vm11, %v1005_v55, %v1009_v57  ;;  %1012 = vst [vmem:[%s190_s5] sm:$0xff] %v1010_v58 }
 0x192   : > { %1013 = vst.msk [vmem:[%s190_s5 + $0x8] sm:$0xff] %vm725_vm5, %v1011_v59 }
 0x193   : > { %1217 = shalt.err (!%p1214_p3)
}
 0x194   : > { %s1218_s14 = scalar_lea.hbm %s1434_s9, 256  ;;  %s1222_s23 = scalar_lea.hbm %s1481_s4, 512 }
 0x195   : > { %p1219_p4 = scmp.ne.s32.totalorder %s1434_s9, %s1218_s14  ;;  %p1223_p9 = scmp.lt.u32.totalorder %s1434_s9, %s1481_s4 }
 0x196   : > { %p1224_p10 = scmp.lt.u32.totalorder %s1222_s23, %s1218_s14  ;;  %p1226_p12 = scmp.lt.u32.totalorder %s1218_s14, %s1434_s9 }
 0x197   : > { %p1220_p7 = pnand %p1219_p4, %p1342_p5 }
 0x198   : > { %p1225_p11 = por %p1224_p10, %p1223_p9 }
 0x199   : > { %p1221_p8 = pneg %p1220_p7 }
 0x19a   : > { %p1227_p13 = por %p1226_p12, %p1225_p11 }
 0x19c   : > { %p1228_p0 = pnand %p1227_p13, %p1221_p8 }
 0x19e   : > { %1231 = shalt.err (!%p1228_p0)
}
 0x19f   : > { %1152 = dma.vmem_to_hbm [thread:$0]  (%p1342_p5), %s1436_s6, 256, %s1434_s9, %s1015_s19  }
 0x1a0 PF: > { %p1158_p1 = scmp.ge.s32.totalorder %s1266_s18, 2  ;;  %s1041_s29 = sand.u32 1, %s1254_s15  }
 0x1a1   : > { %s1042_s30 = scalar_lea.sflag [#allocation3], %s1041_s29 }
 0x1a2   : > { %p1155_p2 = pnand %p1158_p1, %p1346_p6 }
 0x1a4   : > { %1249 = dma.done.wait (!%p1155_p2), %s1042_s30, 256  }
 0x1a5   : > { %1251 = vsyncadd (!%p1155_p2), %s1042_s30, 4294967040  ;;  %p14_p3 = scmp.ge.s32.totalorder %s1329_s21, 4   ;;  %s1484_s15 = smov %s1258_s16 }
 0x1a6   : > { %s1485_s16 = smov %s1262_s17  ;;  %s1486_s17 = smov %s1340_s24 }
 0x1a7   : > { %s1487_s18 = smov %s1329_s21  ;;  %16 = sbr.rel (!%p14_p3) target bundleno = 3 (0x3), region = 79 }
 0x1ae   :  { %1047 = vsyncpa [#allocation3], 1 }
 0x1af   :  { %1049 = vsyncpa [#allocation3 + $0x1], 1 }

</bundles_post_ra>
